<compile_context>
chip_gen: v6e
topology: v6e:2x2x1
jax: 0.10.0
libtpu: 0.0.40
codegen_flags: <defaults>
</compile_context>

<pallas_src>
import functools

import jax
import jax.numpy as jnp
from jax.experimental import pallas as pl
from jax.experimental.pallas import tpu as pltpu

LANES = 128
TARGET_BLOCK_BYTES = 8 * 1024 * 1024   # per VMEM buffer (in / out)
SMALL_BYTES = 2 * 1024 * 1024          # below this: single full-extent block
MIN_GRID_STEPS = 8                     # pipelining + v7x dual-TC sharding
VMEM_LIMIT_BYTES = 48 * 1024 * 1024    # safe on v7x (64 MiB physical VMEM)


def _round_up(a: int, b: int) -> int:
    return ((a + b - 1) // b) * b


def _capped_gelu_kernel(x_ref, o_ref, *, cap):
    # x_ref / o_ref: VMEM tiles [tile_rows, 128] in the caller's native dtype.
    x = x_ref[...].astype(jnp.float32)

    # Exact (erf-based) GELU via the A&S 7.1.26 erfc approximation:
    #   erfc(z) ~= t*(a1 + t*(a2 + t*(a3 + t*(a4 + t*a5)))) * exp(-z^2),
    #   t = 1/(1 + p*z),  z >= 0,  |err(erf)| <= 1.5e-7.
    # The transcendental (exp) lands on the EUP slot instead of XLA's ~30-40-op
    # VALU erf lowering, so the kernel stays HBM-bound on v6e/v7x.
    inv_sqrt2 = jnp.float32(0.7071067811865476)
    p = jnp.float32(0.3275911)
    a1 = jnp.float32(0.254829592)
    a2 = jnp.float32(-0.284496736)
    a3 = jnp.float32(1.421413741)
    a4 = jnp.float32(-1.453152027)
    a5 = jnp.float32(1.061405429)

    z = jnp.abs(x) * inv_sqrt2
    t = jnp.float32(1.0) / (jnp.float32(1.0) + p * z)  # EUP-backed reciprocal lowering
    poly = t * (a1 + t * (a2 + t * (a3 + t * (a4 + t * a5))))
    erfc_z = poly * jnp.exp(-z * z)                    # erfc(|x|/sqrt(2)) in [0, 1]

    # 1 + erf(x/sqrt(2)) = 2 - erfc(z) for x >= 0, and erfc(z) for x < 0.
    one_plus_erf = jnp.where(x >= jnp.float32(0.0), jnp.float32(2.0) - erfc_z, erfc_z)
    g = jnp.float32(0.5) * x * one_plus_erf
    o_ref[...] = jnp.minimum(g, jnp.float32(cap)).astype(o_ref.dtype)


def _capped_gelu_2d(x2d: jax.Array, cap_value: float) -> jax.Array:
    """Run the kernel on a lane-dense [rows, 128] slab (native dtype in/out)."""
    rows, lanes = x2d.shape
    dtype = x2d.dtype
    itemsize = jnp.dtype(dtype).itemsize
    nbytes = rows * lanes * itemsize
    sub = max(8, 32 // itemsize)  # sublane multiple: f32->8, bf16->16, int8/fp8->32

    if nbytes <= SMALL_BYTES:
        # Tiny tensor: one full-extent block (full-dim match satisfies the (8,128) rule).
        tile_rows = rows
    else:
        budget_rows = max(sub, TARGET_BLOCK_BYTES // (lanes * itemsize))
        split_rows = _round_up(pl.cdiv(rows, MIN_GRID_STEPS), sub)
        tile_rows = max(sub, min(budget_rows, split_rows))

    grid = (pl.cdiv(rows, tile_rows),)  # partial last block is clipped by Pallas

    n = rows * lanes
    cost = pl.CostEstimate(
        flops=25 * n,            # abs/mul/Horner/select/min per element
        transcendentals=n,       # one exp per element
        bytes_accessed=2 * n * itemsize,
    )

    kernel = functools.partial(_capped_gelu_kernel, cap=float(cap_value))

    return pl.pallas_call(
        kernel,
        out_shape=jax.ShapeDtypeStruct((rows, lanes), dtype),
        grid_spec=pltpu.PrefetchScalarGridSpec(
            num_scalar_prefetch=0,
            grid=grid,
            in_specs=[pl.BlockSpec((tile_rows, lanes), lambda i: (i, 0))],
            out_specs=pl.BlockSpec((tile_rows, lanes), lambda i: (i, 0)),
        ),
        compiler_params=pltpu.CompilerParams(
            dimension_semantics=("parallel",),
            vmem_limit_bytes=VMEM_LIMIT_BYTES,
        ),
        cost_estimate=cost,
    )(x2d)


def capped_gelu(x: jax.Array, cap_value: float = 1.0) -> jax.Array:
    """Elementwise capped GELU: clamp(gelu_exact(x), max=cap_value)."""
    orig_shape = x.shape
    dtype = x.dtype
    n = x.size

    flat = x.reshape(-1)
    rows = n // LANES
    rem = n - rows * LANES

    main_out = None
    if rows > 0:
        if rem == 0:
            main = flat.reshape(rows, LANES)            # free relayout, no copy pass
        else:
            main = flat[: rows * LANES].reshape(rows, LANES)
        main_out = _capped_gelu_2d(main, cap_value).reshape(-1)

    if rem:
        # <128-element ragged tail: compute exactly in plain JAX (negligible cost)
        # instead of a full-tensor pad + slice round trip.
        tail = flat[rows * LANES :].astype(jnp.float32)
        tail_g = 0.5 * tail * (1.0 + jax.lax.erf(tail * 0.7071067811865476))
        tail_out = jnp.minimum(tail_g, jnp.float32(cap_value)).astype(dtype)
        out_flat = tail_out if main_out is None else jnp.concatenate([main_out, tail_out])
    else:
        out_flat = main_out

    return out_flat.reshape(orig_shape)


if __name__ == "__main__":
    key = jax.random.PRNGKey(0)

    # 1) NCHW input, consistent with how the module is used inside conv blocks.
    x = jax.random.normal(key, (2, 4, 16, 16), dtype=jnp.float32) * 3.0
    y = jax.block_until_ready(capped_gelu(x, cap_value=1.0))
    ref = jnp.minimum(jax.nn.gelu(x, approximate=False), 1.0)
    assert y.shape == x.shape and y.dtype == x.dtype
    assert jnp.allclose(y, ref, atol=1e-5, rtol=1e-5)

    # 2) Ragged size: total elements not a multiple of 128 (exercises tail path).
    x2 = jax.random.normal(jax.random.PRNGKey(1), (2, 3, 5, 7), dtype=jnp.float32) * 3.0
    y2 = jax.block_until_ready(capped_gelu(x2, cap_value=1.0))
    ref2 = jnp.minimum(jax.nn.gelu(x2, approximate=False), 1.0)
    assert y2.shape == x2.shape
    assert jnp.allclose(y2, ref2, atol=1e-5, rtol=1e-5)

    # 3) >2 MiB tensor: exercises the multi-block grid with a partial last block.
    x3 = jax.random.normal(jax.random.PRNGKey(2), (5, 8, 144, 144), dtype=jnp.float32) * 3.0
    y3 = jax.block_until_ready(capped_gelu(x3, cap_value=1.0))
    ref3 = jnp.minimum(jax.nn.gelu(x3, approximate=False), 1.0)
    assert y3.shape == x3.shape
    assert jnp.allclose(y3, ref3, atol=1e-5, rtol=1e-5)

    print("KERNEL_OK")
</pallas_src>

<mosaic_0001>
module attributes {stable_mosaic.version = 11 : i64} {
  func.func @_capped_gelu_kernel(%arg0: i32, %arg1: memref<16x128xf32, #tpu.memory_space<vmem>>, %arg2: memref<16x128xf32, #tpu.memory_space<vmem>>) attributes {dimension_semantics = [#tpu.dimension_semantics<parallel>], iteration_bounds = array<i64: 1>, scalar_prefetch = 0 : i64, scratch_operands = 0 : i64, tpu.core_type = #tpu.core_type<tc>, window_params = [{transform_indices = @transform_0, window_bounds = array<i64: 16, 128>}, {transform_indices = @transform_1, window_bounds = array<i64: 16, 128>}]} {
    %c0 = arith.constant 0 : index
    %c0_0 = arith.constant 0 : index
    %0 = vector.load %arg1[%c0, %c0_0] : memref<16x128xf32, #tpu.memory_space<vmem>>, vector<16x128xf32>
    %1 = math.absf %0 : vector<16x128xf32>
    %cst = arith.constant 0.707106769 : f32
    %2 = vector.broadcast %cst : f32 to vector<16x128xf32>
    %3 = arith.mulf %1, %2 : vector<16x128xf32>
    %cst_1 = arith.constant 0.327591091 : f32
    %4 = vector.broadcast %cst_1 : f32 to vector<16x128xf32>
    %5 = arith.mulf %4, %3 : vector<16x128xf32>
    %cst_2 = arith.constant 1.000000e+00 : f32
    %6 = vector.broadcast %cst_2 : f32 to vector<16x128xf32>
    %7 = arith.addf %6, %5 : vector<16x128xf32>
    %cst_3 = arith.constant 1.000000e+00 : f32
    %8 = vector.broadcast %cst_3 : f32 to vector<16x128xf32>
    %9 = arith.divf %8, %7 : vector<16x128xf32>
    %cst_4 = arith.constant 1.06140542 : f32
    %10 = vector.broadcast %cst_4 : f32 to vector<16x128xf32>
    %11 = arith.mulf %9, %10 : vector<16x128xf32>
    %cst_5 = arith.constant -1.45315206 : f32
    %12 = vector.broadcast %cst_5 : f32 to vector<16x128xf32>
    %13 = arith.addf %12, %11 : vector<16x128xf32>
    %14 = arith.mulf %9, %13 : vector<16x128xf32>
    %cst_6 = arith.constant 1.42141378 : f32
    %15 = vector.broadcast %cst_6 : f32 to vector<16x128xf32>
    %16 = arith.addf %15, %14 : vector<16x128xf32>
    %17 = arith.mulf %9, %16 : vector<16x128xf32>
    %cst_7 = arith.constant -0.284496725 : f32
    %18 = vector.broadcast %cst_7 : f32 to vector<16x128xf32>
    %19 = arith.addf %18, %17 : vector<16x128xf32>
    %20 = arith.mulf %9, %19 : vector<16x128xf32>
    %cst_8 = arith.constant 0.254829586 : f32
    %21 = vector.broadcast %cst_8 : f32 to vector<16x128xf32>
    %22 = arith.addf %21, %20 : vector<16x128xf32>
    %23 = arith.mulf %9, %22 : vector<16x128xf32>
    %cst_9 = arith.constant 0.000000e+00 : f32
    %24 = vector.broadcast %cst_9 : f32 to vector<16x128xf32>
    %25 = arith.subf %24, %3 : vector<16x128xf32>
    %26 = arith.mulf %25, %3 : vector<16x128xf32>
    %27 = math.exp %26 : vector<16x128xf32>
    %28 = arith.mulf %23, %27 : vector<16x128xf32>
    %cst_10 = arith.constant 0.000000e+00 : f32
    %29 = vector.broadcast %cst_10 : f32 to vector<16x128xf32>
    %30 = arith.cmpf oge, %0, %29 : vector<16x128xf32>
    %cst_11 = arith.constant 2.000000e+00 : f32
    %31 = vector.broadcast %cst_11 : f32 to vector<16x128xf32>
    %32 = arith.subf %31, %28 : vector<16x128xf32>
    %33 = arith.select %30, %32, %28 : vector<16x128xi1>, vector<16x128xf32>
    %cst_12 = arith.constant 5.000000e-01 : f32
    %34 = vector.broadcast %cst_12 : f32 to vector<16x128xf32>
    %35 = arith.mulf %34, %0 : vector<16x128xf32>
    %36 = arith.mulf %35, %33 : vector<16x128xf32>
    %cst_13 = arith.constant 1.000000e+00 : f32
    %37 = vector.broadcast %cst_13 : f32 to vector<16x128xf32>
    %38 = arith.minimumf %36, %37 : vector<16x128xf32>
    %c0_14 = arith.constant 0 : index
    %c0_15 = arith.constant 0 : index
    %39 = vector.load %arg2[%c0_14, %c0_15] : memref<16x128xf32, #tpu.memory_space<vmem>>, vector<16x128xf32>
    tpu.vector_store %arg2[%c0_14, %c0_15], %38 {strides = array<i32>} : memref<16x128xf32, #tpu.memory_space<vmem>>, vector<16x128xf32>,
    return
  }
  func.func @transform_0(%arg0: i32) -> (i32, i32) {
    %c0_i32 = arith.constant 0 : i32
    %c0_i32_0 = arith.constant 0 : i32
    return %arg0, %c0_i32 : i32, i32
  }
  func.func @transform_1(%arg0: i32) -> (i32, i32) {
    %c0_i32 = arith.constant 0 : i32
    %c0_i32_0 = arith.constant 0 : i32
    return %arg0, %c0_i32 : i32, i32
  }
}

</mosaic_0001>

<bundles_post_ra>
// kernel: tpu_custom_call.1
= control target key start
LH: loop header
LB: loop body
LE: loop exit
PB: predicated region body
PF: predicated region fallthrough
CT: control target
= control target key end

     0   :  { %6 = vsyncpa [#allocation3], 0  ;;  %s178_s0 = inlined_call_operand.hbm [shape: f32[16,128], index: 0, kind: input, shape index: {}]   ;;  %s179_s1 = inlined_call_operand.hbm [shape: f32[16,128], index: 1, kind: output, shape index: {}]  }
   0x1   :  { %7 = vsyncpa [#allocation4], 0  ;;  %s152_s6 = smov [#allocation2]  }
   0x2   :  { %s13_s7 = sshll.u32 %s152_s6, 4  ;;  %s14_s7 = int_to_ptr.vmem [resolvable:$true] %s13_s7 }
   0x3   :  { %s116_s8 = scalar_lea.vmem %s14_s7, 256  ;;  %p121_p1 = scmp.lt.s32.totalorder %s14_s7, %s14_s7 }
   0x4   :  { %p117_p0 = scmp.ne.s32.totalorder %s14_s7, %s116_s8  ;;  %p122_p2 = scmp.lt.s32.totalorder %s116_s8, %s116_s8 }
   0x6   :  { %p123_p3 = por %p122_p2, %p121_p1 }
   0x8   :  { %p124_p4 = pnand %p123_p3, %p117_p0 }
   0xa   :  { %127 = shalt.err (!%p124_p4)
}
   0xb   :  { %s153_s9 = smov 128   ;;  %s154_s10 = smov 8  }
   0xc   :  { %19 = dma.hbm_to_vmem [thread:$0]  %s178_s0, 256, %s14_s7, [#allocation3], %s153_s9, %s153_s9, %s154_s10  }
   0xd   :  { %148 = dma.done.wait [#allocation3], 256  }
   0xe   :  { %149 = vsyncadd [#allocation3], 4294967040  ;;  %v23_v0 = vld [vmem:[#allocation2] sm:$0xff]  ;;  %v24_v1 = vld [vmem:[#allocation2 + $0x8] sm:$0xff]  ;;  %s155_s0 = smov [#allocation5]  }
   0xf   :  { %v25_v2 = vand.u32 2147483647, %v23_v0  ;;  %v26_v3 = vand.u32 2147483647, %v24_v1  ;;  %vm65_vm0 = vcmp.ge.f32.partialorder %v23_v0, 0.0  ;;  %v71_v39 = vmul.f32 0.5, %v23_v0 }
  0x10   :  { %vm66_vm1 = vcmp.ge.f32.partialorder %v24_v1, 0.0  ;;  %v72_v42 = vmul.f32 0.5, %v24_v1  ;;  %s84_s13 = sshll.u32 %s155_s0, 4  ;;  %s85_s13 = int_to_ptr.vmem [resolvable:$true] %s84_s13 }
  0x11   :  { %v27_v4 = vmul.f32 0.70710677, %v25_v2  ;;  %v28_v5 = vmul.f32 0.70710677, %v26_v3  ;;  %s128_s14 = scalar_lea.vmem %s85_s13, 256  ;;  %p133_p6 = scmp.lt.s32.totalorder %s85_s13, %s85_s13 }
  0x12   :  { %p129_p5 = scmp.ne.s32.totalorder %s85_s13, %s128_s14  ;;  %p134_p7 = scmp.lt.s32.totalorder %s128_s14, %s128_s14 }
  0x13   :  { %v29_v6 = vmul.f32 0.3275911, %v27_v4  ;;  %v30_v7 = vmul.f32 0.3275911, %v28_v5  ;;  %v55_v10 = vsub.f32 0.0, %v27_v4  ;;  %v56_v11 = vsub.f32 0.0, %v28_v5 }
  0x14   :  { %p135_p8 = por %p134_p7, %p133_p6 }
  0x15   :  { %v31_v8 = vadd.f32 1.0, %v29_v6  ;;  %v32_v9 = vadd.f32 1.0, %v30_v7  ;;  %v57_v12 = vmul.f32 %v55_v10, %v27_v4  ;;  %v58_v13 = vmul.f32 %v56_v11, %v28_v5 }
  0x16   :  { %p136_p9 = pnand %p135_p8, %p129_p5 }
  0x17   :  { %100 = vrcp.f32 %v31_v8  ;;  %v59_v14 = vmul.f32 1.442695, %v57_v12  ;;  %v61_v16 = vmul.f32 1.442695, %v58_v13 }
  0x18   :  { %102 = vrcp.f32 %v32_v9 }
  0x19   :  { %104 = vpow2.f32 %v59_v14 }
  0x1a   :  { %106 = vpow2.f32 %v61_v16 }
  0x24   :  { %v101_v15 = vpop.eup %100 }
  0x25   :  { %v103_v17 = vpop.eup %102  ;;  %v37_v18 = vmul.f32 1.0614054, %v101_v15 }
  0x26   :  { %v38_v19 = vmul.f32 1.0614054, %v103_v17  ;;  %v105_v33 = vpop.eup %104 }
  0x27   :  { %v39_v20 = vadd.f32 -1.4531521, %v37_v18  ;;  %v107_v35 = vpop.eup %106 }
  0x28   :  { %v40_v21 = vadd.f32 -1.4531521, %v38_v19 }
  0x29   :  { %v41_v22 = vmul.f32 %v101_v15, %v39_v20 }
  0x2a   :  { %v42_v23 = vmul.f32 %v103_v17, %v40_v21 }
  0x2b   :  { %v43_v24 = vadd.f32 1.4214138, %v41_v22 }
  0x2c   :  { %v44_v25 = vadd.f32 1.4214138, %v42_v23 }
  0x2d   :  { %v45_v26 = vmul.f32 %v101_v15, %v43_v24 }
  0x2e   :  { %v46_v27 = vmul.f32 %v103_v17, %v44_v25 }
  0x2f   :  { %v47_v28 = vadd.f32 -0.28449672, %v45_v26 }
  0x30   :  { %v48_v29 = vadd.f32 -0.28449672, %v46_v27 }
  0x31   :  { %v49_v30 = vmul.f32 %v101_v15, %v47_v28 }
  0x32   :  { %v50_v31 = vmul.f32 %v103_v17, %v48_v29 }
  0x33   :  { %v51_v32 = vadd.f32 0.2548296, %v49_v30 }
  0x34   :  { %v52_v34 = vadd.f32 0.2548296, %v50_v31 }
  0x35   :  { %v53_v36 = vmul.f32 %v101_v15, %v51_v32 }
  0x36   :  { %v54_v37 = vmul.f32 %v103_v17, %v52_v34 }
  0x37   :  { %v63_v38 = vmul.f32 %v105_v33, %v53_v36 }
  0x38   :  { %v64_v40 = vmul.f32 %v107_v35, %v54_v37 }
  0x39   :  { %v67_v41 = vsub.f32 2.0, %v63_v38 }
  0x3a   :  { %v68_v43 = vsub.f32 2.0, %v64_v40 }
  0x3b   :  { %v69_v44 = vsel %vm65_vm0, %v67_v41, %v63_v38 }
  0x3c   :  { %v73_v45 = vmul.f32 %v71_v39, %v69_v44  ;;  %v70_v46 = vsel %vm66_vm1, %v68_v43, %v64_v40 }
  0x3d   :  { %v74_v47 = vmul.f32 %v72_v42, %v70_v46 }
  0x3e   :  { %v75_v48 = vmin.f32 %v73_v45, 1.0 }
  0x3f   :  { %v76_v49 = vmin.f32 %v74_v47, 1.0 }
  0x40   :  { %77 = vst [vmem:[#allocation5] sm:$0xff] %v75_v48 }
  0x41   :  { %78 = vst [vmem:[#allocation5 + $0x8] sm:$0xff] %v76_v49 }
  0x42   :  { %139 = shalt.err (!%p136_p9)
}
  0x43   :  { %90 = dma.vmem_to_hbm [thread:$0]  %s85_s13, 256, %s179_s1, [#allocation4], %s153_s9, %s153_s9, %s154_s10  }
  0x44   :  { %150 = dma.done.wait [#allocation4], 256  }
  0x45   :  { %151 = vsyncadd [#allocation4], 4294967040 }
  0x46   :  { %94 = vsyncpa [#allocation3], 1 }
  0x47   :  { %95 = vsyncpa [#allocation4], 1 }

</bundles_post_ra>
